<compile_context>
chip_gen: v7x
topology: tpu7x:2x2x1
jax: 0.10.0
libtpu: 0.0.40
codegen_flags: <defaults>
</compile_context>

<pallas_src>
import functools
import math

import jax
import jax.numpy as jnp
from jax.experimental import pallas as pl
from jax.experimental.pallas import tpu as pltpu

EPSILON = 1e-40                                    # PyTorch constant (subnormal in f32)
CLAMP_MIN = float(jnp.finfo(jnp.float32).tiny)     # ~1.1754944e-38 (smallest normal f32)
CLAMP_MAX = 1.0
LOG_EPSILON = math.log(EPSILON)                    # what torch yields for x <= 1e-40

LANES = 128
TARGET_BLOCK_BYTES = 2 * 1024 * 1024               # ~2 MiB of input per grid step


def _log_clamped(x_f32):
    """log(clamp(x, EPSILON, 1.0)) with FTZ-safe floor + torch-parity select."""
    logx = jnp.log(jnp.clip(x_f32, CLAMP_MIN, CLAMP_MAX))
    # Values at/below the normal-f32 floor (incl. denormals the VPU flushes and
    # exact zeros) contribute log(1e-40), matching torch.clamp(x, 1e-40, 1.0).
    return jnp.where(x_f32 < CLAMP_MIN, LOG_EPSILON, logx)


def _gloss_kernel(x_ref, out_ref, *, tile_rows, n_valid_rows, has_partial):
    t = pl.program_id(0)

    @pl.when(t == 0)
    def _init():
        out_ref[...] = jnp.zeros_like(out_ref)

    def tile_log_sum(x_f32):
        # Tree of VPU adds down to one (1, 128) row; lane reduce is done once
        # in the wrapper.
        return jnp.sum(_log_clamped(x_f32), axis=0, keepdims=True)

    if not has_partial:
        # rows % tile_rows == 0: every tile is full, no masking anywhere.
        out_ref[...] += tile_log_sum(x_ref[...].astype(jnp.float32))
    else:
        rows_left = n_valid_rows - t * tile_rows   # valid rows in this tile

        @pl.when(rows_left >= tile_rows)
        def _full_tile():
            out_ref[...] += tile_log_sum(x_ref[...].astype(jnp.float32))

        @pl.when(rows_left < tile_rows)
        def _partial_tile():
            # Grid-invariant tile-local iota vs. a scalar threshold; garbage
            # rows of the HBM edge block are replaced by 1.0 (log -> 0).
            row_ids = jax.lax.broadcasted_iota(jnp.int32, (tile_rows, LANES), 0)
            x = jnp.where(row_ids < rows_left,
                          x_ref[...].astype(jnp.float32), 1.0)
            out_ref[...] += tile_log_sum(x)


def gloss(logits_gen: jax.Array) -> jax.Array:
    """Pallas equivalent of GLoss.forward. Returns a scalar (float32)."""
    n_elem = logits_gen.size           # n_elem == 0 -> NaN, same as torch.mean
    flat = logits_gen.reshape(-1)

    # Lane-aligned main part + (< 128 element) tail handled in plain JAX.
    n_main = (n_elem // LANES) * LANES
    if n_main < n_elem:
        tail = flat[n_main:].astype(jnp.float32)
        tail_logsum = jnp.sum(_log_clamped(tail))
    else:
        tail_logsum = jnp.float32(0.0)

    if n_main == 0:
        return -tail_logsum / jnp.float32(n_elem)

    rows = n_main // LANES
    # Free (metadata-only) when n_elem % 128 == 0; otherwise one cheap slice.
    x2d = flat[:n_main].reshape(rows, LANES)

    # Native-dtype HBM blocks of ~2 MiB (4096 f32 rows, 8192 bf16 rows, ...);
    # small inputs get one full-extent block (always a legal block shape).
    itemsize = jnp.dtype(logits_gen.dtype).itemsize
    target_rows = max(8, TARGET_BLOCK_BYTES // (LANES * itemsize))
    tile_rows = rows if rows <= target_rows else int(target_rows)
    n_tiles = (rows + tile_rows - 1) // tile_rows
    has_partial = (rows % tile_rows) != 0

    kernel = functools.partial(
        _gloss_kernel,
        tile_rows=tile_rows,
        n_valid_rows=rows,
        has_partial=has_partial,
    )

    partial = pl.pallas_call(
        kernel,
        out_shape=jax.ShapeDtypeStruct((1, LANES), jnp.float32),
        grid_spec=pltpu.PrefetchScalarGridSpec(
            num_scalar_prefetch=0,
            grid=(n_tiles,),
            in_specs=[pl.BlockSpec((tile_rows, LANES), lambda t: (t, 0))],
            out_specs=pl.BlockSpec((1, LANES), lambda t: (0, 0)),
        ),
        compiler_params=pltpu.CompilerParams(
            dimension_semantics=("arbitrary",),
        ),
    )(x2d)

    total_log = jnp.sum(partial) + tail_logsum
    return -total_log / jnp.float32(n_elem)


def gloss_ref(logits_gen: jax.Array) -> jax.Array:
    """Pure-JAX reference with identical clamp semantics."""
    x = logits_gen.astype(jnp.float32)
    return jnp.mean(-_log_clamped(x))


if __name__ == "__main__":
    key = jax.random.PRNGKey(0)
    k0, k1, k2, k3 = jax.random.split(key, 4)

    # Primary case: small NCHW-ish shape, values in [0, 1.2) to exercise both
    # clamp ends; force one exact zero to exercise the lower clamp / EPSILON.
    x0 = jax.random.uniform(k0, (2, 4, 16, 16), dtype=jnp.float32,
                            minval=0.0, maxval=1.2)
    x0 = x0.at[0, 0, 0, 0].set(0.0)

    # Misaligned case (exercises the plain-JAX tail path + tiny single block).
    x1 = jax.random.uniform(k1, (3, 50), dtype=jnp.float32,
                            minval=0.0, maxval=1.2)

    # Multi-tile case with a partial edge tile (rows = 5000 > 4096).
    x2 = jax.random.uniform(k2, (1, 5000, 128), dtype=jnp.float32,
                            minval=0.0, maxval=1.2)

    # Narrow-dtype case (native bf16 DMA, in-kernel cast).
    x3 = jax.random.uniform(k3, (2, 1100, 160), dtype=jnp.float32,
                            minval=0.0, maxval=1.2).astype(jnp.bfloat16)

    for x in (x0, x1, x2, x3):
        out = jax.block_until_ready(gloss(x))
        ref = jax.block_until_ready(gloss_ref(x))
        assert jnp.allclose(out, ref, rtol=1e-4, atol=1e-5), (x.shape, out, ref)

    print("KERNEL_OK")
</pallas_src>

<mosaic_0001>
module attributes {stable_mosaic.version = 11 : i64} {
  func.func @_gloss_kernel(%arg0: i32, %arg1: memref<16x128xf32, #tpu.memory_space<vmem>>, %arg2: memref<1x128xf32, #tpu.memory_space<vmem>>) attributes {dimension_semantics = [#tpu.dimension_semantics<arbitrary>], iteration_bounds = array<i64: 1>, scalar_prefetch = 0 : i64, scratch_operands = 0 : i64, tpu.core_type = #tpu.core_type<tc>, window_params = [{transform_indices = @transform_0, window_bounds = array<i64: 16, 128>}, {pipeline_mode = #tpu.pipeline_mode<synchronous>, transform_indices = @transform_1, window_bounds = array<i64: 1, 128>}]} {
    %c0_i32 = arith.constant 0 : i32
    %0 = arith.cmpi eq, %arg0, %c0_i32 : i32
    %1 = arith.extui %0 : i1 to i32
    %c0_i32_0 = arith.constant 0 : i32
    %2 = arith.cmpi ne, %1, %c0_i32_0 : i32
    scf.if %2 {
      %cst_10 = arith.constant 0.000000e+00 : f32
      %18 = vector.broadcast %cst_10 : f32 to vector<1x128xf32>
      %c0_11 = arith.constant 0 : index
      %c0_12 = arith.constant 0 : index
      %19 = vector.load %arg2[%c0_11, %c0_12] : memref<1x128xf32, #tpu.memory_space<vmem>>, vector<1x128xf32>
      tpu.vector_store %arg2[%c0_11, %c0_12], %18 {strides = array<i32>} : memref<1x128xf32, #tpu.memory_space<vmem>>, vector<1x128xf32>,
    } else {
    }
    %c0 = arith.constant 0 : index
    %c0_1 = arith.constant 0 : index
    %3 = vector.load %arg2[%c0, %c0_1] : memref<1x128xf32, #tpu.memory_space<vmem>>, vector<1x128xf32>
    %c0_2 = arith.constant 0 : index
    %c0_3 = arith.constant 0 : index
    %4 = vector.load %arg1[%c0_2, %c0_3] : memref<16x128xf32, #tpu.memory_space<vmem>>, vector<16x128xf32>
    %cst = arith.constant 1.17549435E-38 : f32
    %cst_4 = arith.constant 1.000000e+00 : f32
    %5 = vector.broadcast %cst : f32 to vector<16x128xf32>
    %6 = arith.maximumf %5, %4 : vector<16x128xf32>
    %7 = vector.broadcast %cst_4 : f32 to vector<16x128xf32>
    %8 = arith.minimumf %7, %6 : vector<16x128xf32>
    %9 = math.log %8 : vector<16x128xf32>
    %cst_5 = arith.constant 1.17549435E-38 : f32
    %10 = vector.broadcast %cst_5 : f32 to vector<16x128xf32>
    %11 = arith.cmpf olt, %4, %10 : vector<16x128xf32>
    %cst_6 = arith.constant -9.210340e+01 : f32
    %12 = vector.broadcast %cst_6 : f32 to vector<16x128xf32>
    %13 = arith.select %11, %12, %9 : vector<16x128xi1>, vector<16x128xf32>
    %cst_7 = arith.constant dense<0.000000e+00> : vector<128xf32>
    %14 = vector.multi_reduction <add>, %13, %cst_7 [0] : vector<16x128xf32> to vector<128xf32>
    %15 = vector.shape_cast %14 : vector<128xf32> to vector<1x128xf32>
    %16 = arith.addf %3, %15 : vector<1x128xf32>
    %c0_8 = arith.constant 0 : index
    %c0_9 = arith.constant 0 : index
    %17 = vector.load %arg2[%c0_8, %c0_9] : memref<1x128xf32, #tpu.memory_space<vmem>>, vector<1x128xf32>
    tpu.vector_store %arg2[%c0_8, %c0_9], %16 {strides = array<i32>} : memref<1x128xf32, #tpu.memory_space<vmem>>, vector<1x128xf32>,
    return
  }
  func.func @transform_0(%arg0: i32) -> (i32, i32) {
    %c0_i32 = arith.constant 0 : i32
    %c0_i32_0 = arith.constant 0 : i32
    return %arg0, %c0_i32 : i32, i32
  }
  func.func @transform_1(%arg0: i32) -> (i32, i32) {
    %c0_i32 = arith.constant 0 : i32
    %c0_i32_0 = arith.constant 0 : i32
    %c0_i32_1 = arith.constant 0 : i32
    return %c0_i32, %c0_i32_0 : i32, i32
  }
}

</mosaic_0001>

<bundles_post_ra>
// kernel: tpu_custom_call.1
= control target key start
LH: loop header
LB: loop body
LE: loop exit
PB: predicated region body
PF: predicated region fallthrough
CT: control target
= control target key end

     0   :  { %6 = vsyncpa [#allocation3], 0  ;;  %s163_s0 = inlined_call_operand.hbm [shape: f32[16,128], index: 0, kind: input, shape index: {}]   ;;  %s164_s1 = inlined_call_operand.hbm [shape: f32[1,128], index: 1, kind: output, shape index: {}]  }
   0x1   :  { %7 = vsyncpa [#allocation4], 0  ;;  %s124_s6 = smov [#allocation2]   ;;  %s76_s10 = scalar_lea.hbm %s163_s0, 256 }
   0x2   :  { %s13_s7 = sshll.u32 %s124_s6, 4  ;;  %p77_p0 = scmp.ne.s32.totalorder %s163_s0, %s76_s10  ;;  %s14_s7 = int_to_ptr.vmem [resolvable:$true] %s13_s7 }
   0x3   :  { %p80_p1 = scmp.lt.u32.totalorder %s76_s10, %s163_s0 }
   0x5   :  { %p82_p2 = pnand %p80_p1, %p77_p0 }
   0x7   :  { %85 = shalt.err (!%p82_p2)
}
   0x8   :  { %s86_s15 = scalar_lea.vmem %s14_s7, 256  ;;  %p91_p4 = scmp.lt.s32.totalorder %s14_s7, %s14_s7 }
   0x9   :  { %p87_p3 = scmp.ne.s32.totalorder %s14_s7, %s86_s15  ;;  %p92_p5 = scmp.lt.s32.totalorder %s86_s15, %s86_s15 }
   0xb   :  { %p93_p6 = por %p92_p5, %p91_p4 }
   0xd   :  { %p94_p7 = pnand %p93_p6, %p87_p3 }
   0xf   :  { %97 = shalt.err (!%p94_p7)
}
  0x10   :  { %s125_s16 = smov 128   ;;  %s126_s17 = smov 8  }
  0x11   :  { %19 = dma.hbm_to_vmem [thread:$0]  %s163_s0, 256, %s14_s7, [#allocation3], %s125_s16, %s125_s16, %s126_s17  }
  0x12   :  { %120 = dma.done.wait [#allocation3], 256  }
  0x13   :  { %121 = vsyncadd [#allocation3], 4294967040  ;;  %v127_v0 = vmov 0.0   ;;  %v29_v1 = vld [vmem:[#allocation2] sm:$0xff]  ;;  %v30_v2 = vld [vmem:[#allocation2 + $0x8] sm:$0xff]  ;;  %s128_s0 = smov [#allocation5]  }
  0x14   :  { %27 = vst [vmem:[#allocation5] sm:$0x1] %v127_v0  ;;  %v31_v3 = vmax.f32 %v29_v1, 1.1754944e-38  ;;  %v32_v4 = vmax.f32 %v30_v2, 1.1754944e-38  ;;  %vm39_vm0 = vcmp.lt.f32.partialorder %v29_v1, 1.1754944e-38  ;;  %vm40_vm1 = vcmp.lt.f32.partialorder %v30_v2, 1.1754944e-38 }
  0x15   :  { %s58_s20 = sshll.u32 %s128_s0, 4  ;;  %s59_s20 = int_to_ptr.vmem [resolvable:$true] %s58_s20 }
  0x16   :  { %v33_v5 = vmin.f32 %v31_v3, 1.0  ;;  %v34_v6 = vmin.f32 %v32_v4, 1.0  ;;  %s98_s21 = scalar_lea.vmem %s59_s20, 16  ;;  %s102_s22 = scalar_lea.vmem %s59_s20, 32 }
  0x17   :  { %p99_p8 = scmp.ne.s32.totalorder %s59_s20, %s98_s21  ;;  %p103_p9 = scmp.lt.s32.totalorder %s59_s20, %s59_s20 }
  0x18   :  { %72 = vlog2.f32 %v33_v5  ;;  %p104_p10 = scmp.lt.s32.totalorder %s102_s22, %s98_s21 }
  0x19   :  { %74 = vlog2.f32 %v34_v6 }
  0x1a   :  { %p105_p11 = por %p104_p10, %p103_p9 }
  0x1b   :  { %v28_v19 = vld [vmem:[#allocation5] sm:$0x1] }
  0x1c   :  { %p106_p12 = pnand %p105_p11, %p99_p8 }
  0x22   :  { %v73_v7 = vpop.eup %72 }
  0x23   :  { %v75_v8 = vpop.eup %74  ;;  %v36_v9 = vmul.f32 0.6931472, %v73_v7 }
  0x24   :  { %v38_v10 = vmul.f32 0.6931472, %v75_v8 }
  0x25   :  { %v41_v11 = vsel %vm39_vm0, -92.1034, %v36_v9 }
  0x26   :  { %v42_v12 = vsel %vm40_vm1, -92.1034, %v38_v10 }
  0x27   :  { %v43_v13 = vadd.f32 %v42_v12, %v41_v11 }
  0x29   :  { %v44_v14 = vrot.slane %v43_v13, 4 }
  0x2b   :  { %v45_v15 = vadd.f32 %v44_v14, %v43_v13 }
  0x2d   :  { %v46_v16 = vrot.slane %v45_v15, 2 }
  0x2f   :  { %v47_v17 = vadd.f32 %v46_v16, %v45_v15 }
  0x31   :  { %v48_v18 = vrot.slane %v47_v17, 1 }
  0x33   :  { %v49_v20 = vadd.f32 %v48_v18, %v47_v17 }
  0x35   :  { %v50_v21 = vadd.f32 %v49_v20, %v28_v19 }
  0x37   :  { %51 = vst [vmem:[#allocation5] sm:$0x1] %v50_v21 }
  0x38   :  { %109 = shalt.err (!%p106_p12)
}
  0x39   :  { %s110_s25 = scalar_lea.hbm %s164_s1, 16 }
  0x3a   :  { %p111_p13 = scmp.ne.s32.totalorder %s164_s1, %s110_s25  ;;  %p114_p0 = scmp.lt.u32.totalorder %s110_s25, %s164_s1 }
  0x3c   :  { %p116_p1 = pnand %p114_p0, %p111_p13 }
  0x3e   :  { %119 = shalt.err (!%p116_p1)
}
  0x3f   :  { %61 = dma.vmem_to_hbm [thread:$0]  %s59_s20, 16, %s164_s1, [#allocation4]  }
  0x40   :  { %122 = dma.done.wait [#allocation4], 16  }
  0x41   :  { %123 = vsyncadd [#allocation4], 4294967280 }
  0x42   :  { %65 = vsyncpa [#allocation3], 1 }
  0x43   :  { %66 = vsyncpa [#allocation4], 1 }

</bundles_post_ra>
